<compile_context>
chip_gen: v6e
topology: v6e:2x2x1
jax: 0.10.0
libtpu: 0.0.40
codegen_flags: <defaults>
</compile_context>

<pallas_src>
import functools
import math

import jax
import jax.numpy as jnp
from jax import lax
from jax.experimental import pallas as pl
from jax.experimental.pallas import tpu as pltpu


def encoder_layer_kernel(x_ref, wqkv_ref, bqkv_ref, wo_ref, bo_ref,
                         w1_ref, b1_ref, w2_ref, b2_ref,
                         g1_ref, be1_ref, g2_ref, be2_ref,
                         out_ref, attn_ref, *, nhead):
    Bt, S, D = x_ref.shape
    hd = D // nhead

    x3 = x_ref[...]                        # (Bt, S, D)
    x2 = x3.reshape(Bt * S, D)             # fold batch*seq into the matmul M dim

    # --- fused QKV projection (scale already folded into the Q columns) ---
    qkv = jnp.dot(x2, wqkv_ref[...],
                  preferred_element_type=jnp.float32) + bqkv_ref[...]   # (Bt*S, 3D)
    q = qkv[:, :D].reshape(Bt, S, D)
    k = qkv[:, D:2 * D].reshape(Bt, S, D)
    v = qkv[:, 2 * D:].reshape(Bt, S, D)

    # --- multi-head attention, batched over the Bt batch block per head ---
    # TODO(synk): heads could be fully fused into one (Bt*H)-batched dot_general,
    # but that needs a non-minor 4-D transpose; kept as a short static loop of
    # batched einsums for robust Mosaic lowering.
    attn_sum = jnp.zeros((Bt, S, S), jnp.float32)
    ctx_heads = []
    for h in range(nhead):
        sl = slice(h * hd, (h + 1) * hd)
        qh = q[:, :, sl]
        kh = k[:, :, sl]
        vh = v[:, :, sl]
        s = jnp.einsum('bqd,bkd->bqk', qh, kh,
                       preferred_element_type=jnp.float32)              # (Bt, S, S)
        s = s - jnp.max(s, axis=-1, keepdims=True)
        p = jnp.exp(s)
        p = p / jnp.sum(p, axis=-1, keepdims=True)
        attn_sum = attn_sum + p
        ctx_heads.append(jnp.einsum('bqk,bkd->bqd', p, vh,
                                    preferred_element_type=jnp.float32))

    # head-averaged attention weights (PyTorch average_attn_weights=True)
    attn_ref[...] = attn_sum * (1.0 / nhead)

    ctx = jnp.concatenate(ctx_heads, axis=-1).reshape(Bt * S, D)         # dense write, no scratch
    attn_out = jnp.dot(ctx, wo_ref[...],
                       preferred_element_type=jnp.float32) + bo_ref[...]

    # residual + LayerNorm1 (dropout1 identity at inference)
    y = x2 + attn_out
    mu = jnp.mean(y, axis=-1, keepdims=True)
    var = jnp.mean((y - mu) ** 2, axis=-1, keepdims=True)
    y = (y - mu) * lax.rsqrt(var + 1e-5) * g1_ref[...] + be1_ref[...]

    # feed-forward: linear1 -> relu -> linear2 (dropout identity)
    h1 = jnp.dot(y, w1_ref[...], preferred_element_type=jnp.float32) + b1_ref[...]
    h1 = jnp.maximum(h1, 0.0)
    ffn = jnp.dot(h1, w2_ref[...], preferred_element_type=jnp.float32) + b2_ref[...]

    # residual + LayerNorm2 (dropout2 identity at inference)
    z = y + ffn
    mu2 = jnp.mean(z, axis=-1, keepdims=True)
    var2 = jnp.mean((z - mu2) ** 2, axis=-1, keepdims=True)
    z = (z - mu2) * lax.rsqrt(var2 + 1e-5) * g2_ref[...] + be2_ref[...]

    out_ref[...] = z.reshape(Bt, S, D)


def _pick_block_b(B, S):
    """Largest divisor of B keeping the folded M dimension (Bt*S) moderate."""
    bt = 1
    for cand in range(1, B + 1):
        if B % cand == 0 and cand * S <= max(256, S):
            bt = cand
    return bt


def transformer_encoder_layer(src, params, *, nhead, block_b=None):
    """src: (S, B, D) seq-major, like the PyTorch module. Returns (out, weights)."""
    S, B, D = src.shape
    hd = D // nhead
    scale = 1.0 / math.sqrt(hd)

    # fused QKV weights; 1/sqrt(hd) folded into the Q columns (and Q bias)
    wqkv = jnp.concatenate(
        [params["wq"] * scale, params["wk"], params["wv"]], axis=1)      # (D, 3D)
    bqkv = jnp.concatenate(
        [params["bq"] * scale, params["bk"], params["bv"]], axis=1)      # (1, 3D)

    x = jnp.transpose(src, (1, 0, 2))      # -> (B, S, D) batch-major for the kernel

    if block_b is None:
        block_b = _pick_block_b(B, S)
    assert B % block_b == 0

    weights = [wqkv, bqkv, params["wo"], params["bo"],
               params["w1"], params["b1"], params["w2"], params["b2"],
               params["g1"], params["be1"], params["g2"], params["be2"]]

    def wspec(w):   # weight-resident full-array block (constant index map)
        return pl.BlockSpec(w.shape, lambda b: (0, 0))

    kernel = functools.partial(encoder_layer_kernel, nhead=nhead)

    out, attn = pl.pallas_call(
        kernel,
        out_shape=(
            jax.ShapeDtypeStruct((B, S, D), jnp.float32),
            jax.ShapeDtypeStruct((B, S, S), jnp.float32),
        ),
        grid=(B // block_b,),
        in_specs=[pl.BlockSpec((block_b, S, D), lambda b: (b, 0, 0))]
                 + [wspec(w) for w in weights],
        out_specs=(
            pl.BlockSpec((block_b, S, D), lambda b: (b, 0, 0)),
            pl.BlockSpec((block_b, S, S), lambda b: (b, 0, 0)),
        ),
        compiler_params=pltpu.CompilerParams(
            dimension_semantics=("parallel",)),        # batch blocks independent
    )(x, *weights)

    return jnp.transpose(out, (1, 0, 2)), attn   # (S, B, D), (B, S, S)


def reference(src, params, *, nhead):
    """Pure-JAX reference with identical math, for a correctness check."""
    S, B, D = src.shape
    hd = D // nhead
    x = jnp.transpose(src, (1, 0, 2))   # (B, S, D)
    q = x @ params["wq"] + params["bq"]
    k = x @ params["wk"] + params["bk"]
    v = x @ params["wv"] + params["bv"]
    qh = q.reshape(B, S, nhead, hd).transpose(0, 2, 1, 3) / math.sqrt(hd)
    kh = k.reshape(B, S, nhead, hd).transpose(0, 2, 1, 3)
    vh = v.reshape(B, S, nhead, hd).transpose(0, 2, 1, 3)
    s = jnp.einsum("bhqd,bhkd->bhqk", qh, kh)
    p = jax.nn.softmax(s, axis=-1)
    ctx = jnp.einsum("bhqk,bhkd->bhqd", p, vh).transpose(0, 2, 1, 3).reshape(B, S, D)
    attn_out = ctx @ params["wo"] + params["bo"]
    y = x + attn_out
    mu = y.mean(-1, keepdims=True)
    var = ((y - mu) ** 2).mean(-1, keepdims=True)
    y = (y - mu) / jnp.sqrt(var + 1e-5) * params["g1"] + params["be1"]
    h1 = jnp.maximum(y @ params["w1"] + params["b1"], 0.0)
    ffn = h1 @ params["w2"] + params["b2"]
    z = y + ffn
    mu2 = z.mean(-1, keepdims=True)
    var2 = ((z - mu2) ** 2).mean(-1, keepdims=True)
    z = (z - mu2) / jnp.sqrt(var2 + 1e-5) * params["g2"] + params["be2"]
    return jnp.transpose(z, (1, 0, 2)), p.mean(axis=1)


def init_params(key, d_model, nhead, dim_feedforward):
    ks = jax.random.split(key, 8)
    scale = 0.1
    p = {
        # attention in-projection (stored output-dim-last so kernel does x @ W)
        "wq": scale * jax.random.normal(ks[0], (d_model, d_model), jnp.float32),
        "wk": scale * jax.random.normal(ks[1], (d_model, d_model), jnp.float32),
        "wv": scale * jax.random.normal(ks[2], (d_model, d_model), jnp.float32),
        "bq": scale * jax.random.normal(ks[3], (1, d_model), jnp.float32),
        "bk": scale * jax.random.normal(ks[4], (1, d_model), jnp.float32),
        "bv": scale * jax.random.normal(ks[5], (1, d_model), jnp.float32),
        # attention out-projection
        "wo": scale * jax.random.normal(ks[6], (d_model, d_model), jnp.float32),
        "bo": jnp.zeros((1, d_model), jnp.float32),
        # feed-forward
        "w1": scale * jax.random.normal(ks[7], (d_model, dim_feedforward), jnp.float32),
        "b1": jnp.zeros((1, dim_feedforward), jnp.float32),
        "w2": scale * jax.random.normal(ks[0], (dim_feedforward, d_model), jnp.float32),
        "b2": jnp.zeros((1, d_model), jnp.float32),
        # layernorms
        "g1": jnp.ones((1, d_model), jnp.float32),
        "be1": jnp.zeros((1, d_model), jnp.float32),
        "g2": jnp.ones((1, d_model), jnp.float32),
        "be2": jnp.zeros((1, d_model), jnp.float32),
    }
    return p


if __name__ == "__main__":
    S, B, D = 8, 2, 32          # seq, batch, d_model
    NHEAD = 4
    FFN = 64

    key = jax.random.PRNGKey(0)
    k_src, k_par = jax.random.split(key)
    src = jax.random.normal(k_src, (S, B, D), jnp.float32)   # (S, B, D) like PyTorch
    params = init_params(k_par, D, NHEAD, FFN)

    out, weights = transformer_encoder_layer(src, params, nhead=NHEAD)
    out = jax.block_until_ready(out)
    weights = jax.block_until_ready(weights)

    ref_out, ref_w = reference(src, params, nhead=NHEAD)
    assert out.shape == (S, B, D) and weights.shape == (B, S, S)
    assert jnp.allclose(out, ref_out, rtol=1e-4, atol=1e-4)
    assert jnp.allclose(weights, ref_w, rtol=1e-4, atol=1e-4)

    print("KERNEL_OK")
</pallas_src>

<mosaic_0001>
module attributes {stable_mosaic.version = 11 : i64} {
  func.func @encoder_layer_kernel(%arg0: i32, %arg1: memref<2x8x32xf32, #tpu.memory_space<vmem>>, %arg2: memref<32x96xf32, #tpu.memory_space<vmem>>, %arg3: memref<1x96xf32, #tpu.memory_space<vmem>>, %arg4: memref<32x32xf32, #tpu.memory_space<vmem>>, %arg5: memref<1x32xf32, #tpu.memory_space<vmem>>, %arg6: memref<32x64xf32, #tpu.memory_space<vmem>>, %arg7: memref<1x64xf32, #tpu.memory_space<vmem>>, %arg8: memref<64x32xf32, #tpu.memory_space<vmem>>, %arg9: memref<1x32xf32, #tpu.memory_space<vmem>>, %arg10: memref<1x32xf32, #tpu.memory_space<vmem>>, %arg11: memref<1x32xf32, #tpu.memory_space<vmem>>, %arg12: memref<1x32xf32, #tpu.memory_space<vmem>>, %arg13: memref<1x32xf32, #tpu.memory_space<vmem>>, %arg14: memref<2x8x32xf32, #tpu.memory_space<vmem>>, %arg15: memref<2x8x8xf32, #tpu.memory_space<vmem>>) attributes {dimension_semantics = [#tpu.dimension_semantics<parallel>], iteration_bounds = array<i64: 1>, scalar_prefetch = 0 : i64, scratch_operands = 0 : i64, tpu.core_type = #tpu.core_type<tc>, window_params = [{transform_indices = @transform_0, window_bounds = array<i64: 2, 8, 32>}, {pipeline_mode = #tpu.pipeline_mode<synchronous>, transform_indices = @transform_1, window_bounds = array<i64: 32, 96>}, {pipeline_mode = #tpu.pipeline_mode<synchronous>, transform_indices = @transform_2, window_bounds = array<i64: 1, 96>}, {pipeline_mode = #tpu.pipeline_mode<synchronous>, transform_indices = @transform_3, window_bounds = array<i64: 32, 32>}, {pipeline_mode = #tpu.pipeline_mode<synchronous>, transform_indices = @transform_4, window_bounds = array<i64: 1, 32>}, {pipeline_mode = #tpu.pipeline_mode<synchronous>, transform_indices = @transform_5, window_bounds = array<i64: 32, 64>}, {pipeline_mode = #tpu.pipeline_mode<synchronous>, transform_indices = @transform_6, window_bounds = array<i64: 1, 64>}, {pipeline_mode = #tpu.pipeline_mode<synchronous>, transform_indices = @transform_7, window_bounds = array<i64: 64, 32>}, {pipeline_mode = #tpu.pipeline_mode<synchronous>, transform_indices = @transform_8, window_bounds = array<i64: 1, 32>}, {pipeline_mode = #tpu.pipeline_mode<synchronous>, transform_indices = @transform_9, window_bounds = array<i64: 1, 32>}, {pipeline_mode = #tpu.pipeline_mode<synchronous>, transform_indices = @transform_10, window_bounds = array<i64: 1, 32>}, {pipeline_mode = #tpu.pipeline_mode<synchronous>, transform_indices = @transform_11, window_bounds = array<i64: 1, 32>}, {pipeline_mode = #tpu.pipeline_mode<synchronous>, transform_indices = @transform_12, window_bounds = array<i64: 1, 32>}, {transform_indices = @transform_13, window_bounds = array<i64: 2, 8, 32>}, {transform_indices = @transform_14, window_bounds = array<i64: 2, 8, 8>}]} {
    %c0 = arith.constant 0 : index
    %c0_0 = arith.constant 0 : index
    %c0_1 = arith.constant 0 : index
    %0 = vector.load %arg1[%c0, %c0_0, %c0_1] : memref<2x8x32xf32, #tpu.memory_space<vmem>>, vector<2x8x32xf32>
    %1 = vector.shape_cast %0 : vector<2x8x32xf32> to vector<16x32xf32>
    %c0_2 = arith.constant 0 : index
    %c0_3 = arith.constant 0 : index
    %2 = vector.load %arg2[%c0_2, %c0_3] : memref<32x96xf32, #tpu.memory_space<vmem>>, vector<32x96xf32>
    %cst = arith.constant dense<0.000000e+00> : vector<16x96xf32>
    %3 = tpu.matmul %1, %2, %cst {dimension_numbers = #tpu.dot_dimension_numbers<[1], [0], [0], [1], [0, 0, 1, 1], [], []>} : vector<16x32xf32>, vector<32x96xf32>, vector<16x96xf32> -> vector<16x96xf32>
    %c0_4 = arith.constant 0 : index
    %c0_5 = arith.constant 0 : index
    %4 = vector.load %arg3[%c0_4, %c0_5] : memref<1x96xf32, #tpu.memory_space<vmem>>, vector<1x96xf32>
    %5 = vector.broadcast %4 : vector<1x96xf32> to vector<16x96xf32>
    %6 = arith.addf %3, %5 : vector<16x96xf32>
    %7 = vector.extract_strided_slice %6 {offsets = [0, 0], sizes = [16, 32], strides = [1, 1]} : vector<16x96xf32> to vector<16x32xf32>
    %8 = vector.shape_cast %7 : vector<16x32xf32> to vector<2x8x32xf32>
    %9 = vector.extract_strided_slice %6 {offsets = [0, 32], sizes = [16, 32], strides = [1, 1]} : vector<16x96xf32> to vector<16x32xf32>
    %10 = vector.shape_cast %9 : vector<16x32xf32> to vector<2x8x32xf32>
    %11 = vector.extract_strided_slice %6 {offsets = [0, 64], sizes = [16, 32], strides = [1, 1]} : vector<16x96xf32> to vector<16x32xf32>
    %12 = vector.shape_cast %11 : vector<16x32xf32> to vector<2x8x32xf32>
    %cst_6 = arith.constant 0.000000e+00 : f32
    %13 = vector.broadcast %cst_6 : f32 to vector<2x8x8xf32>
    %14 = vector.extract_strided_slice %8 {offsets = [0, 0, 0], sizes = [2, 8, 8], strides = [1, 1, 1]} : vector<2x8x32xf32> to vector<2x8x8xf32>
    %15 = vector.extract_strided_slice %10 {offsets = [0, 0, 0], sizes = [2, 8, 8], strides = [1, 1, 1]} : vector<2x8x32xf32> to vector<2x8x8xf32>
    %16 = vector.extract_strided_slice %12 {offsets = [0, 0, 0], sizes = [2, 8, 8], strides = [1, 1, 1]} : vector<2x8x32xf32> to vector<2x8x8xf32>
    "tpu.trace_start"() <{level = 10 : i32, message = "bqd,bkd->bqk"}> : () -> ()
    %cst_7 = arith.constant dense<0.000000e+00> : vector<2x8x8xf32>
    %17 = tpu.matmul %14, %15, %cst_7 {dimension_numbers = #tpu.dot_dimension_numbers<[2], [2], [1], [1], [0, 0, 0, 1, 1, 1], [0], [0]>} : vector<2x8x8xf32>, vector<2x8x8xf32>, vector<2x8x8xf32> -> vector<2x8x8xf32>
    "tpu.trace_stop"() : () -> ()
    %cst_8 = arith.constant dense<0xFF800000> : vector<2x8xf32>
    %18 = vector.multi_reduction <maximumf>, %17, %cst_8 [2] : vector<2x8x8xf32> to vector<2x8xf32>
    %19 = vector.shape_cast %18 : vector<2x8xf32> to vector<2x8x1xf32>
    %20 = vector.broadcast %19 : vector<2x8x1xf32> to vector<2x8x8xf32>
    %21 = arith.subf %17, %20 : vector<2x8x8xf32>
    %22 = math.exp %21 : vector<2x8x8xf32>
    %cst_9 = arith.constant dense<0.000000e+00> : vector<2x8xf32>
    %23 = vector.multi_reduction <add>, %22, %cst_9 [2] : vector<2x8x8xf32> to vector<2x8xf32>
    %24 = vector.shape_cast %23 : vector<2x8xf32> to vector<2x8x1xf32>
    %25 = vector.broadcast %24 : vector<2x8x1xf32> to vector<2x8x8xf32>
    %26 = arith.divf %22, %25 : vector<2x8x8xf32>
    %27 = arith.addf %13, %26 : vector<2x8x8xf32>
    "tpu.trace_start"() <{level = 10 : i32, message = "bqk,bkd->bqd"}> : () -> ()
    %cst_10 = arith.constant dense<0.000000e+00> : vector<2x8x8xf32>
    %28 = tpu.matmul %26, %16, %cst_10 {dimension_numbers = #tpu.dot_dimension_numbers<[2], [1], [1], [2], [0, 0, 0, 1, 1, 2], [0], [0]>} : vector<2x8x8xf32>, vector<2x8x8xf32>, vector<2x8x8xf32> -> vector<2x8x8xf32>
    "tpu.trace_stop"() : () -> ()
    %29 = vector.extract_strided_slice %8 {offsets = [0, 0, 8], sizes = [2, 8, 8], strides = [1, 1, 1]} : vector<2x8x32xf32> to vector<2x8x8xf32>
    %30 = vector.extract_strided_slice %10 {offsets = [0, 0, 8], sizes = [2, 8, 8], strides = [1, 1, 1]} : vector<2x8x32xf32> to vector<2x8x8xf32>
    %31 = vector.extract_strided_slice %12 {offsets = [0, 0, 8], sizes = [2, 8, 8], strides = [1, 1, 1]} : vector<2x8x32xf32> to vector<2x8x8xf32>
    "tpu.trace_start"() <{level = 10 : i32, message = "bqd,bkd->bqk"}> : () -> ()
    %cst_11 = arith.constant dense<0.000000e+00> : vector<2x8x8xf32>
    %32 = tpu.matmul %29, %30, %cst_11 {dimension_numbers = #tpu.dot_dimension_numbers<[2], [2], [1], [1], [0, 0, 0, 1, 1, 1], [0], [0]>} : vector<2x8x8xf32>, vector<2x8x8xf32>, vector<2x8x8xf32> -> vector<2x8x8xf32>
    "tpu.trace_stop"() : () -> ()
    %cst_12 = arith.constant dense<0xFF800000> : vector<2x8xf32>
    %33 = vector.multi_reduction <maximumf>, %32, %cst_12 [2] : vector<2x8x8xf32> to vector<2x8xf32>
    %34 = vector.shape_cast %33 : vector<2x8xf32> to vector<2x8x1xf32>
    %35 = vector.broadcast %34 : vector<2x8x1xf32> to vector<2x8x8xf32>
    %36 = arith.subf %32, %35 : vector<2x8x8xf32>
    %37 = math.exp %36 : vector<2x8x8xf32>
    %cst_13 = arith.constant dense<0.000000e+00> : vector<2x8xf32>
    %38 = vector.multi_reduction <add>, %37, %cst_13 [2] : vector<2x8x8xf32> to vector<2x8xf32>
    %39 = vector.shape_cast %38 : vector<2x8xf32> to vector<2x8x1xf32>
    %40 = vector.broadcast %39 : vector<2x8x1xf32> to vector<2x8x8xf32>
    %41 = arith.divf %37, %40 : vector<2x8x8xf32>
    %42 = arith.addf %27, %41 : vector<2x8x8xf32>
    "tpu.trace_start"() <{level = 10 : i32, message = "bqk,bkd->bqd"}> : () -> ()
    %cst_14 = arith.constant dense<0.000000e+00> : vector<2x8x8xf32>
    %43 = tpu.matmul %41, %31, %cst_14 {dimension_numbers = #tpu.dot_dimension_numbers<[2], [1], [1], [2], [0, 0, 0, 1, 1, 2], [0], [0]>} : vector<2x8x8xf32>, vector<2x8x8xf32>, vector<2x8x8xf32> -> vector<2x8x8xf32>
    "tpu.trace_stop"() : () -> ()
    %44 = vector.extract_strided_slice %8 {offsets = [0, 0, 16], sizes = [2, 8, 8], strides = [1, 1, 1]} : vector<2x8x32xf32> to vector<2x8x8xf32>
    %45 = vector.extract_strided_slice %10 {offsets = [0, 0, 16], sizes = [2, 8, 8], strides = [1, 1, 1]} : vector<2x8x32xf32> to vector<2x8x8xf32>
    %46 = vector.extract_strided_slice %12 {offsets = [0, 0, 16], sizes = [2, 8, 8], strides = [1, 1, 1]} : vector<2x8x32xf32> to vector<2x8x8xf32>
    "tpu.trace_start"() <{level = 10 : i32, message = "bqd,bkd->bqk"}> : () -> ()
    %cst_15 = arith.constant dense<0.000000e+00> : vector<2x8x8xf32>
    %47 = tpu.matmul %44, %45, %cst_15 {dimension_numbers = #tpu.dot_dimension_numbers<[2], [2], [1], [1], [0, 0, 0, 1, 1, 1], [0], [0]>} : vector<2x8x8xf32>, vector<2x8x8xf32>, vector<2x8x8xf32> -> vector<2x8x8xf32>
    "tpu.trace_stop"() : () -> ()
    %cst_16 = arith.constant dense<0xFF800000> : vector<2x8xf32>
    %48 = vector.multi_reduction <maximumf>, %47, %cst_16 [2] : vector<2x8x8xf32> to vector<2x8xf32>
    %49 = vector.shape_cast %48 : vector<2x8xf32> to vector<2x8x1xf32>
    %50 = vector.broadcast %49 : vector<2x8x1xf32> to vector<2x8x8xf32>
    %51 = arith.subf %47, %50 : vector<2x8x8xf32>
    %52 = math.exp %51 : vector<2x8x8xf32>
    %cst_17 = arith.constant dense<0.000000e+00> : vector<2x8xf32>
    %53 = vector.multi_reduction <add>, %52, %cst_17 [2] : vector<2x8x8xf32> to vector<2x8xf32>
    %54 = vector.shape_cast %53 : vector<2x8xf32> to vector<2x8x1xf32>
    %55 = vector.broadcast %54 : vector<2x8x1xf32> to vector<2x8x8xf32>
    %56 = arith.divf %52, %55 : vector<2x8x8xf32>
    %57 = arith.addf %42, %56 : vector<2x8x8xf32>
    "tpu.trace_start"() <{level = 10 : i32, message = "bqk,bkd->bqd"}> : () -> ()
    %cst_18 = arith.constant dense<0.000000e+00> : vector<2x8x8xf32>
    %58 = tpu.matmul %56, %46, %cst_18 {dimension_numbers = #tpu.dot_dimension_numbers<[2], [1], [1], [2], [0, 0, 0, 1, 1, 2], [0], [0]>} : vector<2x8x8xf32>, vector<2x8x8xf32>, vector<2x8x8xf32> -> vector<2x8x8xf32>
    "tpu.trace_stop"() : () -> ()
    %59 = vector.extract_strided_slice %8 {offsets = [0, 0, 24], sizes = [2, 8, 8], strides = [1, 1, 1]} : vector<2x8x32xf32> to vector<2x8x8xf32>
    %60 = vector.extract_strided_slice %10 {offsets = [0, 0, 24], sizes = [2, 8, 8], strides = [1, 1, 1]} : vector<2x8x32xf32> to vector<2x8x8xf32>
    %61 = vector.extract_strided_slice %12 {offsets = [0, 0, 24], sizes = [2, 8, 8], strides = [1, 1, 1]} : vector<2x8x32xf32> to vector<2x8x8xf32>
    "tpu.trace_start"() <{level = 10 : i32, message = "bqd,bkd->bqk"}> : () -> ()
    %cst_19 = arith.constant dense<0.000000e+00> : vector<2x8x8xf32>
    %62 = tpu.matmul %59, %60, %cst_19 {dimension_numbers = #tpu.dot_dimension_numbers<[2], [2], [1], [1], [0, 0, 0, 1, 1, 1], [0], [0]>} : vector<2x8x8xf32>, vector<2x8x8xf32>, vector<2x8x8xf32> -> vector<2x8x8xf32>
    "tpu.trace_stop"() : () -> ()
    %cst_20 = arith.constant dense<0xFF800000> : vector<2x8xf32>
    %63 = vector.multi_reduction <maximumf>, %62, %cst_20 [2] : vector<2x8x8xf32> to vector<2x8xf32>
    %64 = vector.shape_cast %63 : vector<2x8xf32> to vector<2x8x1xf32>
    %65 = vector.broadcast %64 : vector<2x8x1xf32> to vector<2x8x8xf32>
    %66 = arith.subf %62, %65 : vector<2x8x8xf32>
    %67 = math.exp %66 : vector<2x8x8xf32>
    %cst_21 = arith.constant dense<0.000000e+00> : vector<2x8xf32>
    %68 = vector.multi_reduction <add>, %67, %cst_21 [2] : vector<2x8x8xf32> to vector<2x8xf32>
    %69 = vector.shape_cast %68 : vector<2x8xf32> to vector<2x8x1xf32>
    %70 = vector.broadcast %69 : vector<2x8x1xf32> to vector<2x8x8xf32>
    %71 = arith.divf %67, %70 : vector<2x8x8xf32>
    %72 = arith.addf %57, %71 : vector<2x8x8xf32>
    "tpu.trace_start"() <{level = 10 : i32, message = "bqk,bkd->bqd"}> : () -> ()
    %cst_22 = arith.constant dense<0.000000e+00> : vector<2x8x8xf32>
    %73 = tpu.matmul %71, %61, %cst_22 {dimension_numbers = #tpu.dot_dimension_numbers<[2], [1], [1], [2], [0, 0, 0, 1, 1, 2], [0], [0]>} : vector<2x8x8xf32>, vector<2x8x8xf32>, vector<2x8x8xf32> -> vector<2x8x8xf32>
    "tpu.trace_stop"() : () -> ()
    %cst_23 = arith.constant 2.500000e-01 : f32
    %74 = vector.broadcast %cst_23 : f32 to vector<2x8x8xf32>
    %75 = arith.mulf %72, %74 : vector<2x8x8xf32>
    %c0_24 = arith.constant 0 : index
    %c0_25 = arith.constant 0 : index
    %c0_26 = arith.constant 0 : index
    %76 = vector.load %arg15[%c0_24, %c0_25, %c0_26] : memref<2x8x8xf32, #tpu.memory_space<vmem>>, vector<2x8x8xf32>
    tpu.vector_store %arg15[%c0_24, %c0_25, %c0_26], %75 {strides = array<i32>} : memref<2x8x8xf32, #tpu.memory_space<vmem>>, vector<2x8x8xf32>,
    %77 = tpu.concatenate %28, %43, %58, %73 in 2 : vector<2x8x8xf32>, vector<2x8x8xf32>, vector<2x8x8xf32>, vector<2x8x8xf32> -> vector<2x8x32xf32>
    %78 = vector.shape_cast %77 : vector<2x8x32xf32> to vector<16x32xf32>
    %c0_27 = arith.constant 0 : index
    %c0_28 = arith.constant 0 : index
    %79 = vector.load %arg4[%c0_27, %c0_28] : memref<32x32xf32, #tpu.memory_space<vmem>>, vector<32x32xf32>
    %cst_29 = arith.constant dense<0.000000e+00> : vector<16x32xf32>
    %80 = tpu.matmul %78, %79, %cst_29 {dimension_numbers = #tpu.dot_dimension_numbers<[1], [0], [0], [1], [0, 0, 1, 1], [], []>} : vector<16x32xf32>, vector<32x32xf32>, vector<16x32xf32> -> vector<16x32xf32>
    %c0_30 = arith.constant 0 : index
    %c0_31 = arith.constant 0 : index
    %81 = vector.load %arg5[%c0_30, %c0_31] : memref<1x32xf32, #tpu.memory_space<vmem>>, vector<1x32xf32>
    %82 = vector.broadcast %81 : vector<1x32xf32> to vector<16x32xf32>
    %83 = arith.addf %80, %82 : vector<16x32xf32>
    %84 = arith.addf %1, %83 : vector<16x32xf32>
    %cst_32 = arith.constant dense<0.000000e+00> : vector<16xf32>
    %85 = vector.multi_reduction <add>, %84, %cst_32 [1] : vector<16x32xf32> to vector<16xf32>
    %86 = vector.shape_cast %85 : vector<16xf32> to vector<16x1xf32>
    %cst_33 = arith.constant 3.200000e+01 : f32
    %87 = vector.broadcast %cst_33 : f32 to vector<16x1xf32>
    %88 = arith.divf %86, %87 : vector<16x1xf32>
    %89 = vector.broadcast %88 : vector<16x1xf32> to vector<16x32xf32>
    %90 = arith.subf %84, %89 : vector<16x32xf32>
    %91 = arith.mulf %90, %90 : vector<16x32xf32>
    %cst_34 = arith.constant dense<0.000000e+00> : vector<16xf32>
    %92 = vector.multi_reduction <add>, %91, %cst_34 [1] : vector<16x32xf32> to vector<16xf32>
    %93 = vector.shape_cast %92 : vector<16xf32> to vector<16x1xf32>
    %cst_35 = arith.constant 3.200000e+01 : f32
    %94 = vector.broadcast %cst_35 : f32 to vector<16x1xf32>
    %95 = arith.divf %93, %94 : vector<16x1xf32>
    %96 = vector.broadcast %88 : vector<16x1xf32> to vector<16x32xf32>
    %97 = arith.subf %84, %96 : vector<16x32xf32>
    %cst_36 = arith.constant 9.99999974E-6 : f32
    %98 = vector.broadcast %cst_36 : f32 to vector<16x1xf32>
    %99 = arith.addf %95, %98 : vector<16x1xf32>
    %100 = math.rsqrt %99 : vector<16x1xf32>
    %101 = vector.broadcast %100 : vector<16x1xf32> to vector<16x32xf32>
    %102 = arith.mulf %97, %101 : vector<16x32xf32>
    %c0_37 = arith.constant 0 : index
    %c0_38 = arith.constant 0 : index
    %103 = vector.load %arg10[%c0_37, %c0_38] : memref<1x32xf32, #tpu.memory_space<vmem>>, vector<1x32xf32>
    %104 = vector.broadcast %103 : vector<1x32xf32> to vector<16x32xf32>
    %105 = arith.mulf %102, %104 : vector<16x32xf32>
    %c0_39 = arith.constant 0 : index
    %c0_40 = arith.constant 0 : index
    %106 = vector.load %arg11[%c0_39, %c0_40] : memref<1x32xf32, #tpu.memory_space<vmem>>, vector<1x32xf32>
    %107 = vector.broadcast %106 : vector<1x32xf32> to vector<16x32xf32>
    %108 = arith.addf %105, %107 : vector<16x32xf32>
    %c0_41 = arith.constant 0 : index
    %c0_42 = arith.constant 0 : index
    %109 = vector.load %arg6[%c0_41, %c0_42] : memref<32x64xf32, #tpu.memory_space<vmem>>, vector<32x64xf32>
    %cst_43 = arith.constant dense<0.000000e+00> : vector<16x64xf32>
    %110 = tpu.matmul %108, %109, %cst_43 {dimension_numbers = #tpu.dot_dimension_numbers<[1], [0], [0], [1], [0, 0, 1, 1], [], []>} : vector<16x32xf32>, vector<32x64xf32>, vector<16x64xf32> -> vector<16x64xf32>
    %c0_44 = arith.constant 0 : index
    %c0_45 = arith.constant 0 : index
    %111 = vector.load %arg7[%c0_44, %c0_45] : memref<1x64xf32, #tpu.memory_space<vmem>>, vector<1x64xf32>
    %112 = vector.broadcast %111 : vector<1x64xf32> to vector<16x64xf32>
    %113 = arith.addf %110, %112 : vector<16x64xf32>
    %cst_46 = arith.constant 0.000000e+00 : f32
    %114 = vector.broadcast %cst_46 : f32 to vector<16x64xf32>
    %115 = arith.maximumf %113, %114 : vector<16x64xf32>
    %c0_47 = arith.constant 0 : index
    %c0_48 = arith.constant 0 : index
    %116 = vector.load %arg8[%c0_47, %c0_48] : memref<64x32xf32, #tpu.memory_space<vmem>>, vector<64x32xf32>
    %cst_49 = arith.constant dense<0.000000e+00> : vector<16x32xf32>
    %117 = tpu.matmul %115, %116, %cst_49 {dimension_numbers = #tpu.dot_dimension_numbers<[1], [0], [0], [1], [0, 0, 1, 1], [], []>} : vector<16x64xf32>, vector<64x32xf32>, vector<16x32xf32> -> vector<16x32xf32>
    %c0_50 = arith.constant 0 : index
    %c0_51 = arith.constant 0 : index
    %118 = vector.load %arg9[%c0_50, %c0_51] : memref<1x32xf32, #tpu.memory_space<vmem>>, vector<1x32xf32>
    %119 = vector.broadcast %118 : vector<1x32xf32> to vector<16x32xf32>
    %120 = arith.addf %117, %119 : vector<16x32xf32>
    %121 = arith.addf %108, %120 : vector<16x32xf32>
    %cst_52 = arith.constant dense<0.000000e+00> : vector<16xf32>
    %122 = vector.multi_reduction <add>, %121, %cst_52 [1] : vector<16x32xf32> to vector<16xf32>
    %123 = vector.shape_cast %122 : vector<16xf32> to vector<16x1xf32>
    %cst_53 = arith.constant 3.200000e+01 : f32
    %124 = vector.broadcast %cst_53 : f32 to vector<16x1xf32>
    %125 = arith.divf %123, %124 : vector<16x1xf32>
    %126 = vector.broadcast %125 : vector<16x1xf32> to vector<16x32xf32>
    %127 = arith.subf %121, %126 : vector<16x32xf32>
    %128 = arith.mulf %127, %127 : vector<16x32xf32>
    %cst_54 = arith.constant dense<0.000000e+00> : vector<16xf32>
    %129 = vector.multi_reduction <add>, %128, %cst_54 [1] : vector<16x32xf32> to vector<16xf32>
    %130 = vector.shape_cast %129 : vector<16xf32> to vector<16x1xf32>
    %cst_55 = arith.constant 3.200000e+01 : f32
    %131 = vector.broadcast %cst_55 : f32 to vector<16x1xf32>
    %132 = arith.divf %130, %131 : vector<16x1xf32>
    %133 = vector.broadcast %125 : vector<16x1xf32> to vector<16x32xf32>
    %134 = arith.subf %121, %133 : vector<16x32xf32>
    %cst_56 = arith.constant 9.99999974E-6 : f32
    %135 = vector.broadcast %cst_56 : f32 to vector<16x1xf32>
    %136 = arith.addf %132, %135 : vector<16x1xf32>
    %137 = math.rsqrt %136 : vector<16x1xf32>
    %138 = vector.broadcast %137 : vector<16x1xf32> to vector<16x32xf32>
    %139 = arith.mulf %134, %138 : vector<16x32xf32>
    %c0_57 = arith.constant 0 : index
    %c0_58 = arith.constant 0 : index
    %140 = vector.load %arg12[%c0_57, %c0_58] : memref<1x32xf32, #tpu.memory_space<vmem>>, vector<1x32xf32>
    %141 = vector.broadcast %140 : vector<1x32xf32> to vector<16x32xf32>
    %142 = arith.mulf %139, %141 : vector<16x32xf32>
    %c0_59 = arith.constant 0 : index
    %c0_60 = arith.constant 0 : index
    %143 = vector.load %arg13[%c0_59, %c0_60] : memref<1x32xf32, #tpu.memory_space<vmem>>, vector<1x32xf32>
    %144 = vector.broadcast %143 : vector<1x32xf32> to vector<16x32xf32>
    %145 = arith.addf %142, %144 : vector<16x32xf32>
    %146 = vector.shape_cast %145 : vector<16x32xf32> to vector<2x8x32xf32>
    %c0_61 = arith.constant 0 : index
    %c0_62 = arith.constant 0 : index
    %c0_63 = arith.constant 0 : index
    %147 = vector.load %arg14[%c0_61, %c0_62, %c0_63] : memref<2x8x32xf32, #tpu.memory_space<vmem>>, vector<2x8x32xf32>
    tpu.vector_store %arg14[%c0_61, %c0_62, %c0_63], %146 {strides = array<i32>} : memref<2x8x32xf32, #tpu.memory_space<vmem>>, vector<2x8x32xf32>,
    return
  }
  func.func @transform_0(%arg0: i32) -> (i32, i32, i32) {
    %c0_i32 = arith.constant 0 : i32
    %c0_i32_0 = arith.constant 0 : i32
    %c0_i32_1 = arith.constant 0 : i32
    return %arg0, %c0_i32, %c0_i32_0 : i32, i32, i32
  }
  func.func @transform_1(%arg0: i32) -> (i32, i32) {
    %c0_i32 = arith.constant 0 : i32
    %c0_i32_0 = arith.constant 0 : i32
    %c0_i32_1 = arith.constant 0 : i32
    return %c0_i32, %c0_i32_0 : i32, i32
  }
  func.func @transform_2(%arg0: i32) -> (i32, i32) {
    %c0_i32 = arith.constant 0 : i32
    %c0_i32_0 = arith.constant 0 : i32
    %c0_i32_1 = arith.constant 0 : i32
    return %c0_i32, %c0_i32_0 : i32, i32
  }
  func.func @transform_3(%arg0: i32) -> (i32, i32) {
    %c0_i32 = arith.constant 0 : i32
    %c0_i32_0 = arith.constant 0 : i32
    %c0_i32_1 = arith.constant 0 : i32
    return %c0_i32, %c0_i32_0 : i32, i32
  }
  func.func @transform_4(%arg0: i32) -> (i32, i32) {
    %c0_i32 = arith.constant 0 : i32
    %c0_i32_0 = arith.constant 0 : i32
    %c0_i32_1 = arith.constant 0 : i32
    return %c0_i32, %c0_i32_0 : i32, i32
  }
  func.func @transform_5(%arg0: i32) -> (i32, i32) {
    %c0_i32 = arith.constant 0 : i32
    %c0_i32_0 = arith.constant 0 : i32
    %c0_i32_1 = arith.constant 0 : i32
    return %c0_i32, %c0_i32_0 : i32, i32
  }
  func.func @transform_6(%arg0: i32) -> (i32, i32) {
    %c0_i32 = arith.constant 0 : i32
    %c0_i32_0 = arith.constant 0 : i32
    %c0_i32_1 = arith.constant 0 : i32
    return %c0_i32, %c0_i32_0 : i32, i32
  }
  func.func @transform_7(%arg0: i32) -> (i32, i32) {
    %c0_i32 = arith.constant 0 : i32
    %c0_i32_0 = arith.constant 0 : i32
    %c0_i32_1 = arith.constant 0 : i32
    return %c0_i32, %c0_i32_0 : i32, i32
  }
  func.func @transform_8(%arg0: i32) -> (i32, i32) {
    %c0_i32 = arith.constant 0 : i32
    %c0_i32_0 = arith.constant 0 : i32
    %c0_i32_1 = arith.constant 0 : i32
    return %c0_i32, %c0_i32_0 : i32, i32
  }
  func.func @transform_9(%arg0: i32) -> (i32, i32) {
    %c0_i32 = arith.constant 0 : i32
    %c0_i32_0 = arith.constant 0 : i32
    %c0_i32_1 = arith.constant 0 : i32
    return %c0_i32, %c0_i32_0 : i32, i32
  }
  func.func @transform_10(%arg0: i32) -> (i32, i32) {
    %c0_i32 = arith.constant 0 : i32
    %c0_i32_0 = arith.constant 0 : i32
    %c0_i32_1 = arith.constant 0 : i32
    return %c0_i32, %c0_i32_0 : i32, i32
  }
  func.func @transform_11(%arg0: i32) -> (i32, i32) {
    %c0_i32 = arith.constant 0 : i32
    %c0_i32_0 = arith.constant 0 : i32
    %c0_i32_1 = arith.constant 0 : i32
    return %c0_i32, %c0_i32_0 : i32, i32
  }
  func.func @transform_12(%arg0: i32) -> (i32, i32) {
    %c0_i32 = arith.constant 0 : i32
    %c0_i32_0 = arith.constant 0 : i32
    %c0_i32_1 = arith.constant 0 : i32
    return %c0_i32, %c0_i32_0 : i32, i32
  }
  func.func @transform_13(%arg0: i32) -> (i32, i32, i32) {
    %c0_i32 = arith.constant 0 : i32
    %c0_i32_0 = arith.constant 0 : i32
    %c0_i32_1 = arith.constant 0 : i32
    return %arg0, %c0_i32, %c0_i32_0 : i32, i32, i32
  }
  func.func @transform_14(%arg0: i32) -> (i32, i32, i32) {
    %c0_i32 = arith.constant 0 : i32
    %c0_i32_0 = arith.constant 0 : i32
    %c0_i32_1 = arith.constant 0 : i32
    return %arg0, %c0_i32, %c0_i32_0 : i32, i32, i32
  }
}

</mosaic_0001>

<bundles_post_ra>
// kernel: tpu_custom_call.1
= control target key start
LH: loop header
LB: loop body
LE: loop exit
PB: predicated region body
PF: predicated region fallthrough
CT: control target
= control target key end

     0   :  { %20 = vsyncpa [#allocation3], 0  ;;  %s2663_s0 = inlined_call_operand.hbm [shape: f32[2,8,32], index: 0, kind: input, shape index: {}]   ;;  %s2664_s1 = inlined_call_operand.vmem [shape: f32[32,96], index: 1, kind: input, shape index: {}]   ;;  %s2665_s2 = inlined_call_operand.vmem [shape: f32[1,96], index: 2, kind: input, shape index: {}]   ;;  %s2666_s3 = inlined_call_operand.vmem [shape: f32[32,32], index: 3, kind: input, shape index: {}]   ;;  %s2667_s4 = inlined_call_operand.vmem [shape: f32[1,32], index: 4, kind: input, shape index: {}]   ;;  %s2668_s5 = inlined_call_operand.vmem [shape: f32[32,64], index: 5, kind: input, shape index: {}]   ;;  %s2669_s6 = inlined_call_operand.vmem [shape: f32[1,64], index: 6, kind: input, shape index: {}]   ;;  %s2670_s7 = inlined_call_operand.vmem [shape: f32[64,32], index: 7, kind: input, shape index: {}]   ;;  %s2671_s8 = inlined_call_operand.vmem [shape: f32[1,32], index: 8, kind: input, shape index: {}]   ;;  %s2672_s9 = inlined_call_operand.vmem [shape: f32[1,32], index: 9, kind: input, shape index: {}]   ;;  %s2673_s10 = inlined_call_operand.vmem [shape: f32[1,32], index: 10, kind: input, shape index: {}]   ;;  %s2674_s11 = inlined_call_operand.vmem [shape: f32[1,32], index: 11, kind: input, shape index: {}]   ;;  %s2675_s12 = inlined_call_operand.vmem [shape: f32[1,32], index: 12, kind: input, shape index: {}]   ;;  %s2676_s13 = inlined_call_operand.hbm [shape: f32[2,8,32], index: 13, kind: output, shape index: {0}]   ;;  %s2677_s14 = inlined_call_operand.hbm [shape: f32[2,8,8], index: 14, kind: output, shape index: {1}]  }
   0x1   :  { %21 = vsyncpa [#allocation4], 0 }
   0x2   :  { %22 = vsyncpa [#allocation7], 0  ;;  %s2289_s29 = smov [#allocation2]  }
   0x3   :  { %s28_s30 = sshll.u32 %s2289_s29, 4  ;;  %s29_s30 = int_to_ptr.vmem [resolvable:$true] %s28_s30 }
   0x4   :  { %s2231_s15 = scalar_lea.vmem %s29_s30, 256  ;;  %p2236_p1 = scmp.lt.s32.totalorder %s29_s30, %s29_s30 }
   0x5   :  { %p2232_p0 = scmp.ne.s32.totalorder %s29_s30, %s2231_s15  ;;  %p2237_p2 = scmp.lt.s32.totalorder %s2231_s15, %s2231_s15 }
   0x7   :  { %p2238_p3 = por %p2237_p2, %p2236_p1 }
   0x9   :  { %p2239_p4 = pnand %p2238_p3, %p2232_p0 }
   0xb   :  { %2242 = shalt.err (!%p2239_p4)
}
   0xc   :  { %s2290_s16 = smov 128   ;;  %s2291_s17 = smov 8  }
   0xd   :  { %34 = dma.hbm_to_vmem [thread:$0]  %s2663_s0, 256, %s29_s30, [#allocation3], %s2290_s16, %s2290_s16, %s2291_s17  }
   0xe   :  { %2283 = dma.done.wait [#allocation3], 256  }
   0xf   :  { %2284 = vsyncadd [#allocation3], 4294967040  ;;  %vm75_vm0 = vcmask 261120   ;;  %v67_v0 = vld [vmem:[%s2664_s1 + $0x18] sm:$0xff]  ;;  %v66_v1 = vld [vmem:[%s2664_s1 + $0x10] sm:$0xff]  ;;  %v2292_v6 = vmov 0.0  }
  0x10   :  { %2031 = vmatprep.subr.mxu1 %v67_v0  ;;  %v2396_v2 = vld [vmem:[#allocation2] sm:$0xff]  ;;  %v65_v3 = vld [vmem:[%s2664_s1 + $0x8] sm:$0xff]  ;;  %2052 = vmatprep.subr.mxu0 %v2292_v6  ;;  %vm2293_vm1 = vmmov 0   ;;  %s2294_s28 = smov 96   ;;  %vm160_vm2 = vcmask 64512   ;;  %s2296_s29 = smov 88  }
  0x11   :  { %2032 = vmatpush3.msra.mxu1 %v67_v0  ;;  %2039 = vmatprep.mubr.msk.f32.mxu1 %vm75_vm0, %v2396_v2  ;;  %v64_v4 = vld [vmem:[%s2664_s1] sm:$0xff]  ;;  %v2406_v5 = vld [vmem:[#allocation2 + $0x8] sm:$0xff]  ;;  %s2297_s30 = smov 120   ;;  %s2298_s15 = smov 56   ;;  %vm1517_vm3 = vcmask 195584   ;;  %vm1514_vm4 = vcmask 130048  }
  0x12   :  { %2033 = vmatprep.subr.mxu1 %v66_v1  ;;  %2054 = vmatprep.mubr.msk.f32.mxu0 %vm2293_vm1, %v2292_v6  ;;  %v1931_v8 = vld [vmem:[%s2665_s2] ss:$0 sm:$0xff]  ;;  %s2295_s2 = smov 64   ;;  %s2299_s18 = smov 80   ;;  %vm1768_vm5 = vcmask 523264  }
  0x13   :  { %2034 = vmatpush3.msra.mxu1 %v66_v1  ;;  %s2300_s19 = smov 112   ;;  %s2301_s20 = smov 48  }
  0x14   :  { %2035 = vmatprep.subr.mxu1 %v65_v3  ;;  %s2302_s21 = smov 72   ;;  %s2303_s22 = smov 104  }
  0x15   :  { %2036 = vmatpush3.msra.mxu1 %v65_v3  ;;  %s2304_s23 = smov 40   ;;  %s2305_s24 = smov 16  }
  0x16   :  { %2037 = vmatprep.subr.mxu1 %v64_v4 }
  0x17   :  { %2038 = vmatpush3.msra.mxu1 %v64_v4 }
  0x18   :  { %2040 = vmatmul.mubr.msk.f32.vlgmr.msra.gmra.mxu1 %vm75_vm0, %v2406_v5  ;;  %2042 = vmatprep.subr.mxu1 %v2292_v6 }
  0x19   :  { %2044 = vmatprep.mubr.msk.f32.mxu1 %vm2293_vm1, %v2292_v6 }
  0xd8   :  { %v2041_v7 = vpop.f32.mrf.mxu1 }
  0xd9   :  { %v2422_v11 = vadd.f32 %v2041_v7, %v1931_v8 }
  0xda   :  { %v148_v9 = vpop.f32.mrf.mxu1 }
  0xdb   :  { %v2419_v10 = vadd.f32 %v1931_v8, %v148_v9 }
  0xdd   :  { %158 = vrot.lane.b32.xlu0 %v2419_v10, %s2294_s28 }
  0xe1   :  { %236 = vrot.lane.b32.xlu0 %v2422_v11, %s2294_s28 }
 0x14f   :  { %v159_v12 = vpop.permute.xlu0 %158 }
 0x150   :  { %2043 = vmatpush3.xpose.msk.msra.mxu1 %vm160_vm2, %v159_v12 }
 0x151   :  { %2047 = vmatprep.subr.mxu1 %v2292_v6 }
 0x153   :  { %2045 = vmatmul.mubr.msk.f32.vlgmr.msra.gmra.mxu1 %vm160_vm2, %v2419_v10  ;;  %v237_v13 = vpop.permute.xlu0 %236 }
 0x154   :  { %2048 = vmatpush3.xpose.msk.msra.mxu1 %vm160_vm2, %v237_v13  ;;  %2049 = vmatprep.mubr.msk.f32.mxu1 %vm2293_vm1, %v2292_v6 }
 0x155   :  { %2057 = vmatprep.subr.mxu1 %v2292_v6 }
 0x157   :  { %2050 = vmatmul.mubr.msk.f32.vlgmr.msra.gmra.mxu1 %vm160_vm2, %v2422_v11 }
 0x158   :  { %2059 = vmatprep.mubr.msk.f32.mxu1 %vm2293_vm1, %v2292_v6 }
 0x213   :  { %v231_v14 = vpop.f32.mrf.mxu1 }
 0x214   :  { %v312_v15 = vsel %vm160_vm2, %v231_v14, -inf }
 0x215   :  { %313 = vmax.xlane.f32.xlu1 %v312_v15  ;;  %v2046_v16 = vpop.f32.mrf.mxu1 }
 0x217   :  { %v308_v17 = vpop.f32.mrf.mxu1 }
 0x218   :  { %v315_v18 = vsel %vm160_vm2, %v308_v17, -inf }
 0x219   :  { %316 = vmax.xlane.f32.xlu1 %v315_v18  ;;  %v2051_v19 = vpop.f32.mrf.mxu1 }
 0x22a   :  { %336 = vrot.lane.b32.xlu1 %v2419_v10, %s2295_s2 }
 0x22e   :  { %412 = vrot.lane.b32.xlu1 %v2422_v11, %s2295_s2 }
 0x232   :  { %490 = vrot.lane.b32.xlu1 %v2419_v10, %s2296_s29 }
 0x236   :  { %568 = vrot.lane.b32.xlu1 %v2422_v11, %s2296_s29 }
 0x29e   :  { %v314_v20 = vpop.xlane.xlu1 %313 }
 0x29f   :  { %v318_v21 = vsub.f32 %v231_v14, %v314_v20 }
 0x2a1   :  { %v320_v22 = vmul.f32 1.442695, %v318_v21 }
 0x2a2   :  { %v317_v23 = vpop.xlane.xlu1 %316 }
 0x2a3   :  { %2183 = vpow2.f32 %v320_v22  ;;  %v319_v24 = vsub.f32 %v308_v17, %v317_v23 }
 0x2a5   :  { %v322_v25 = vmul.f32 1.442695, %v319_v24 }
 0x2a6   :  { %v337_v26 = vpop.permute.xlu1 %336 }
 0x2a7   :  { %2185 = vpow2.f32 %v322_v25  ;;  %2053 = vmatpush3.msra.mxu0 %v337_v26 }
 0x2a8   :  { %2062 = vmatprep.subr.mxu0 %v2292_v6 }
 0x2aa   :  { %v413_v27 = vpop.permute.xlu1 %412 }
 0x2ab   :  { %2058 = vmatpush3.msra.mxu1 %v413_v27 }
 0x2ac   :  { %2067 = vmatprep.subr.mxu1 %v2292_v6 }
 0x2ae   :  { %v491_v32 = vpop.permute.xlu1 %490 }
 0x2b0   :  { %v2184_v28 = vpop.eup %2183 }
 0x2b1   :  { %v324_v29 = vsel %vm160_vm2, %v2184_v28, 0.0 }
 0x2b2   :  { %325 = vadd.xlane.f32.xlu0 %v324_v29  ;;  %v569_v33 = vpop.permute.xlu1 %568 }
 0x2b4   :  { %v2186_v30 = vpop.eup %2185 }
 0x2b5   :  { %v327_v31 = vsel %vm160_vm2, %v2186_v30, 0.0 }
 0x2b6   :  { %328 = vadd.xlane.f32.xlu1 %v327_v31 }
 0x2c7   :  { %566 = vrot.lane.b32.xlu1 %v2422_v11, %s2297_s30 }
 0x2c8   :  { %488 = vrot.lane.b32.xlu0 %v2419_v10, %s2297_s30  ;;  %s2306_s30 = smov 24  }
 0x33b   :  { %v326_v34 = vpop.xlane.xlu0 %325 }
 0x33c   :  { %2187 = vrcp.f32 %v326_v34 }
 0x33f   :  { %v329_v35 = vpop.xlane.xlu1 %328  ;;  %v489_v40 = vpop.permute.xlu0 %488 }
 0x340   :  { %2189 = vrcp.f32 %v329_v35 }
 0x343   :  { %v567_v41 = vpop.permute.xlu1 %566 }
 0x349   :  { %v2188_v36 = vpop.eup %2187 }
 0x34a   :  { %v2449_v37 = vmul.f32 %v2188_v36, %v2184_v28 }
 0x34c   :  { %2055 = vmatmul.mubr.msk.f32.vlgmr.msra.gmra.mxu0 %vm160_vm2, %v2449_v37 }
 0x34d   :  { %v2190_v38 = vpop.eup %2189  ;;  %2063 = vmatpush3.xpose.msk.msra.mxu0 %vm160_vm2, %v491_v32  ;;  %2064 = vmatprep.mubr.msk.f32.mxu0 %vm2293_vm1, %v2292_v6 }
 0x34e   :  { %v2456_v39 = vmul.f32 %v2190_v38, %v2186_v30  ;;  %2072 = vmatprep.subr.mxu0 %v2292_v6 }
 0x350   :  { %2060 = vmatmul.mubr.msk.f32.vlgmr.msra.gmra.mxu1 %vm160_vm2, %v2456_v39  ;;  %2065 = vmatmul.mubr.msk.f32.vlgmr.msra.gmra.mxu0 %vm160_vm2, %v489_v40 }
 0x351   :  { %2068 = vmatpush3.xpose.msk.msra.mxu1 %vm160_vm2, %v569_v33  ;;  %2069 = vmatprep.mubr.msk.f32.mxu1 %vm2293_vm1, %v2292_v6 }
 0x352   :  { %2077 = vmatprep.subr.mxu1 %v2292_v6  ;;  %2074 = vmatprep.mubr.msk.f32.mxu0 %vm2293_vm1, %v2292_v6 }
 0x354   :  { %2070 = vmatmul.mubr.msk.f32.vlgmr.msra.gmra.mxu1 %vm160_vm2, %v567_v41 }
 0x355   :  { %2079 = vmatprep.mubr.msk.f32.mxu1 %vm2293_vm1, %v2292_v6 }
 0x40c   :  { %v2471_v42 = vpop.f32.mrf.mxu0 }
 0x40e   :  { %v2056_v43 = vpop.f32.mrf.mxu0 }
 0x410   :  { %v2473_v44 = vpop.f32.mrf.mxu1  ;;  %v562_v45 = vpop.f32.mrf.mxu0 }
 0x411   :  { %v644_v46 = vsel %vm160_vm2, %v562_v45, -inf }
 0x412   :  { %v2061_v47 = vpop.f32.mrf.mxu1  ;;  %645 = vmax.xlane.f32.xlu1 %v644_v46  ;;  %v2066_v48 = vpop.f32.mrf.mxu0 }
 0x414   :  { %v640_v49 = vpop.f32.mrf.mxu1 }
 0x415   :  { %v647_v50 = vsel %vm160_vm2, %v640_v49, -inf }
 0x416   :  { %648 = vmax.xlane.f32.xlu0 %v647_v50  ;;  %v2071_v51 = vpop.f32.mrf.mxu1 }
 0x423   :  { %668 = vrot.lane.b32.xlu1 %v2419_v10, %s2298_s15 }
 0x427   :  { %822 = vrot.lane.b32.xlu1 %v2419_v10, %s2299_s18 }
 0x42b   :  { %900 = vrot.lane.b32.xlu1 %v2422_v11, %s2299_s18 }
 0x42c   :  { %744 = vrot.lane.b32.xlu0 %v2422_v11, %s2298_s15 }
 0x430   :  { %820 = vrot.lane.b32.xlu0 %v2419_v10, %s2300_s19 }
 0x49b   :  { %v646_v52 = vpop.xlane.xlu1 %645 }
 0x49c   :  { %v650_v53 = vsub.f32 %v562_v45, %v646_v52 }
 0x49e   :  { %v652_v54 = vmul.f32 1.442695, %v650_v53 }
 0x49f   :  { %v669_v55 = vpop.permute.xlu1 %668  ;;  %v649_v56 = vpop.xlane.xlu0 %648 }
 0x4a0   :  { %2191 = vpow2.f32 %v652_v54  ;;  %v651_v57 = vsub.f32 %v640_v49, %v649_v56  ;;  %2073 = vmatpush3.msra.mxu0 %v669_v55 }
 0x4a1   :  { %2082 = vmatprep.subr.mxu0 %v2292_v6 }
 0x4a2   :  { %v654_v58 = vmul.f32 1.442695, %v651_v57 }
 0x4a3   :  { %v745_v59 = vpop.permute.xlu0 %744  ;;  %v823_v0 = vpop.permute.xlu1 %822 }
 0x4a4   :  { %2193 = vpow2.f32 %v654_v58  ;;  %2078 = vmatpush3.msra.mxu1 %v745_v59 }
 0x4a5   :  { %2087 = vmatprep.subr.mxu1 %v2292_v6 }
 0x4a7   :  { %v901_v1 = vpop.permute.xlu1 %900  ;;  %v821_v13 = vpop.permute.xlu0 %820 }
 0x4ad   :  { %v2192_v60 = vpop.eup %2191 }
 0x4ae   :  { %v656_v61 = vsel %vm160_vm2, %v2192_v60, 0.0 }
 0x4af   :  { %657 = vadd.xlane.f32.xlu1 %v656_v61 }
 0x4b1   :  { %v2194_v62 = vpop.eup %2193 }
 0x4b2   :  { %v659_v63 = vsel %vm160_vm2, %v2194_v62, 0.0 }
 0x4b3   :  { %660 = vadd.xlane.f32.xlu1 %v659_v63 }
 0x4c4   :  { %898 = vrot.lane.b32.xlu1 %v2422_v11, %s2300_s19 }
 0x538   :  { %v658_v3 = vpop.xlane.xlu1 %657 }
 0x539   :  { %2195 = vrcp.f32 %v658_v3 }
 0x53c   :  { %v661_v4 = vpop.xlane.xlu1 %660 }
 0x53d   :  { %2197 = vrcp.f32 %v661_v4 }
 0x540   :  { %v899_v14 = vpop.permute.xlu1 %898 }
 0x546   :  { %v2196_v7 = vpop.eup %2195 }
 0x547   :  { %v2487_v8 = vmul.f32 %v2196_v7, %v2192_v60 }
 0x549   :  { %2075 = vmatmul.mubr.msk.f32.vlgmr.msra.gmra.mxu0 %vm160_vm2, %v2487_v8  ;;  %v666_v46 = vadd.f32 %v2487_v8, %v2449_v37 }
 0x54a   :  { %v2198_v9 = vpop.eup %2197  ;;  %2083 = vmatpush3.xpose.msk.msra.mxu0 %vm160_vm2, %v823_v0  ;;  %2084 = vmatprep.mubr.msk.f32.mxu0 %vm2293_vm1, %v2292_v6 }
 0x54b   :  { %v2494_v12 = vmul.f32 %v2198_v9, %v2194_v62  ;;  %2092 = vmatprep.subr.mxu0 %v2292_v6 }
 0x54d   :  { %2080 = vmatmul.mubr.msk.f32.vlgmr.msra.gmra.mxu1 %vm160_vm2, %v2494_v12  ;;  %2085 = vmatmul.mubr.msk.f32.vlgmr.msra.gmra.mxu0 %vm160_vm2, %v821_v13  ;;  %v667_v51 = vadd.f32 %v2494_v12, %v2456_v39 }
 0x54e   :  { %2088 = vmatpush3.xpose.msk.msra.mxu1 %vm160_vm2, %v901_v1  ;;  %2089 = vmatprep.mubr.msk.f32.mxu1 %vm2293_vm1, %v2292_v6 }
 0x54f   :  { %2097 = vmatprep.subr.mxu1 %v2292_v6  ;;  %2094 = vmatprep.mubr.msk.f32.mxu0 %vm2293_vm1, %v2292_v6 }
 0x551   :  { %2090 = vmatmul.mubr.msk.f32.vlgmr.msra.gmra.mxu1 %vm160_vm2, %v899_v14 }
 0x552   :  { %2099 = vmatprep.mubr.msk.f32.mxu1 %vm2293_vm1, %v2292_v6 }
 0x609   :  { %v2509_v15 = vpop.f32.mrf.mxu0 }
 0x60b   :  { %v2076_v16 = vpop.f32.mrf.mxu0 }
 0x60d   :  { %v2511_v17 = vpop.f32.mrf.mxu1  ;;  %v894_v18 = vpop.f32.mrf.mxu0 }
 0x60e   :  { %v976_v19 = vsel %vm160_vm2, %v894_v18, -inf }
 0x60f   :  { %v2081_v20 = vpop.f32.mrf.mxu1  ;;  %977 = vmax.xlane.f32.xlu0 %v976_v19  ;;  %v2086_v21 = vpop.f32.mrf.mxu0 }
 0x611   :  { %v972_v22 = vpop.f32.mrf.mxu1 }
 0x612   :  { %v979_v23 = vsel %vm160_vm2, %v972_v22, -inf }
 0x613   :  { %980 = vmax.xlane.f32.xlu1 %v979_v23  ;;  %v2091_v24 = vpop.f32.mrf.mxu1  ;;  %v1523_v23 = vld [vmem:[%s2666_s3 + $0x18] sm:$0xff] }
 0x614   :  { %v1522_v24 = vld [vmem:[%s2666_s3 + $0x10] sm:$0xff] }
 0x624   :  { %1000 = vrot.lane.b32.xlu1 %v2419_v10, %s2301_s20 }
 0x625   :  { %1076 = vrot.lane.b32.xlu0 %v2422_v11, %s2301_s20 }
 0x628   :  { %1154 = vrot.lane.b32.xlu1 %v2419_v10, %s2302_s21 }
 0x62c   :  { %1232 = vrot.lane.b32.xlu1 %v2422_v11, %s2302_s21 }
 0x630   :  { %1230 = vrot.lane.b32.xlu1 %v2422_v11, %s2303_s22 }
 0x698   :  { %v978_v25 = vpop.xlane.xlu0 %977 }
 0x699   :  { %v982_v26 = vsub.f32 %v894_v18, %v978_v25  ;;  %v1521_v25 = vld [vmem:[%s2666_s3 + $0x8] sm:$0xff] }
 0x69b   :  { %v984_v27 = vmul.f32 1.442695, %v982_v26  ;;  %v1520_v26 = vld [vmem:[%s2666_s3] sm:$0xff] }
 0x69c   :  { %v981_v28 = vpop.xlane.xlu1 %980  ;;  %v1077_v29 = vpop.permute.xlu0 %1076 }
 0x69d   :  { %2199 = vpow2.f32 %v984_v27  ;;  %v983_v30 = vsub.f32 %v972_v22, %v981_v28  ;;  %2098 = vmatpush3.msra.mxu1 %v1077_v29 }
 0x69e   :  { %2107 = vmatprep.subr.mxu1 %v2292_v6 }
 0x69f   :  { %v986_v31 = vmul.f32 1.442695, %v983_v30 }
 0x6a0   :  { %v1001_v32 = vpop.permute.xlu1 %1000 }
 0x6a1   :  { %2201 = vpow2.f32 %v986_v31  ;;  %2093 = vmatpush3.msra.mxu0 %v1001_v32 }
 0x6a2   :  { %2102 = vmatprep.subr.mxu0 %v2292_v6 }
 0x6a4   :  { %v1155_v41 = vpop.permute.xlu1 %1154 }
 0x6a8   :  { %v1233_v49 = vpop.permute.xlu1 %1232 }
 0x6aa   :  { %v2200_v33 = vpop.eup %2199 }
 0x6ab   :  { %v988_v34 = vsel %vm160_vm2, %v2200_v33, 0.0 }
 0x6ac   :  { %989 = vadd.xlane.f32.xlu0 %v988_v34  ;;  %v1231_v53 = vpop.permute.xlu1 %1230 }
 0x6ae   :  { %v2202_v35 = vpop.eup %2201 }
 0x6af   :  { %v991_v36 = vsel %vm160_vm2, %v2202_v35, 0.0 }
 0x6b0   :  { %992 = vadd.xlane.f32.xlu0 %v991_v36 }
 0x6c6   :  { %1152 = vrot.lane.b32.xlu0 %v2419_v10, %s2303_s22 }
 0x735   :  { %v990_v38 = vpop.xlane.xlu0 %989 }
 0x736   :  { %2203 = vrcp.f32 %v990_v38 }
 0x739   :  { %v993_v40 = vpop.xlane.xlu0 %992 }
 0x73a   :  { %2205 = vrcp.f32 %v993_v40 }
 0x73d   :  { %v1153_v52 = vpop.permute.xlu0 %1152 }
 0x743   :  { %v2204_v43 = vpop.eup %2203 }
 0x744   :  { %v995_v45 = vmul.f32 %v2204_v43, %v2200_v33 }
 0x746   :  { %2095 = vmatmul.mubr.msk.f32.vlgmr.msra.gmra.mxu0 %vm160_vm2, %v995_v45  ;;  %v2528_v47 = vadd.f32 %v995_v45, %v666_v46 }
 0x747   :  { %v2206_v48 = vpop.eup %2205  ;;  %2103 = vmatpush3.xpose.msk.msra.mxu0 %vm160_vm2, %v1155_v41  ;;  %2104 = vmatprep.mubr.msk.f32.mxu0 %vm2293_vm1, %v2292_v6 }
 0x748   :  { %v997_v50 = vmul.f32 %v2206_v48, %v2202_v35  ;;  %2112 = vmatprep.subr.mxu0 %v2292_v6 }
 0x74a   :  { %2100 = vmatmul.mubr.msk.f32.vlgmr.msra.gmra.mxu1 %vm160_vm2, %v997_v50  ;;  %2105 = vmatmul.mubr.msk.f32.vlgmr.msra.gmra.mxu0 %vm160_vm2, %v1153_v52  ;;  %v999_v37 = vadd.f32 %v997_v50, %v667_v51 }
 0x74b   :  { %2108 = vmatpush3.xpose.msk.msra.mxu1 %vm160_vm2, %v1233_v49  ;;  %2109 = vmatprep.mubr.msk.f32.mxu1 %vm2293_vm1, %v2292_v6 }
 0x74c   :  { %2117 = vmatprep.subr.mxu1 %v2292_v6  ;;  %2114 = vmatprep.mubr.msk.f32.mxu0 %vm2293_vm1, %v2292_v6 }
 0x74e   :  { %2110 = vmatmul.mubr.msk.f32.vlgmr.msra.gmra.mxu1 %vm160_vm2, %v1231_v53 }
 0x74f   :  { %2119 = vmatprep.mubr.msk.f32.mxu1 %vm2293_vm1, %v2292_v6 }
 0x806   :  { %v1072_v39 = vpop.f32.mrf.mxu0 }
 0x808   :  { %v2096_v54 = vpop.f32.mrf.mxu0 }
 0x80a   :  { %v1148_v55 = vpop.f32.mrf.mxu1  ;;  %v1226_v56 = vpop.f32.mrf.mxu0 }
 0x80b   :  { %v1308_v57 = vsel %vm160_vm2, %v1226_v56, -inf }
 0x80c   :  { %v2101_v58 = vpop.f32.mrf.mxu1  ;;  %1309 = vmax.xlane.f32.xlu0 %v1308_v57  ;;  %v2106_v59 = vpop.f32.mrf.mxu0 }
 0x80e   :  { %v1304_v60 = vpop.f32.mrf.mxu1 }
 0x80f   :  { %v1311_v61 = vsel %vm160_vm2, %v1304_v60, -inf }
 0x810   :  { %1312 = vmax.xlane.f32.xlu1 %v1311_v61  ;;  %v2111_v62 = vpop.f32.mrf.mxu1  ;;  %v1661_v61 = vld [vmem:[%s2668_s5 + $0x10] sm:$0xff] }
 0x811   :  { %v1660_v62 = vld [vmem:[%s2668_s5 + $0x8] sm:$0xff] }
 0x821   :  { %1332 = vrot.lane.b32.xlu1 %v2419_v10, %s2304_s23 }
 0x825   :  { %1490 = vrot.lane.b32.xlu1 %v2509_v15, %s2291_s17 }
 0x829   :  { %1492 = vrot.lane.b32.xlu1 %v2511_v17, %s2291_s17 }
 0x82d   :  { %1500 = vrot.lane.b32.xlu1 %v1148_v55, %s2305_s24 }
 0x895   :  { %v1310_v6 = vpop.xlane.xlu0 %1309 }
 0x896   :  { %v1314_v63 = vsub.f32 %v1226_v56, %v1310_v6  ;;  %v1659_v6 = vld [vmem:[%s2668_s5] sm:$0xff] }
 0x898   :  { %v1316_v0 = vmul.f32 1.442695, %v1314_v63  ;;  %v1760_v63 = vld [vmem:[%s2670_s7 + $0x38] sm:$0xff] }
 0x899   :  { %v1313_v1 = vpop.xlane.xlu1 %1312 }
 0x89a   :  { %2207 = vpow2.f32 %v1316_v0  ;;  %v1315_v3 = vsub.f32 %v1304_v60, %v1313_v1  ;;  %v1759_v0 = vld [vmem:[%s2670_s7 + $0x30] sm:$0xff]  ;;  %v1758_v1 = vld [vmem:[%s2670_s7 + $0x28] sm:$0xff] }
 0x89c   :  { %v1318_v4 = vmul.f32 1.442695, %v1315_v3  ;;  %v1757_v3 = vld [vmem:[%s2670_s7 + $0x20] sm:$0xff] }
 0x89d   :  { %v1333_v7 = vpop.permute.xlu1 %1332 }
 0x89e   :  { %2209 = vpow2.f32 %v1318_v4  ;;  %2113 = vmatpush3.msra.mxu0 %v1333_v7 }
 0x89f   :  { %2122 = vmatprep.subr.mxu0 %v1523_v23 }
 0x8a1   :  { %v1491_v31 = vpop.permute.xlu1 %1490 }
 0x8a2   :  { %v1512_v34 = vsel %vm160_vm2, %v2471_v42, %v1491_v31 }
 0x8a5   :  { %v1493_v32 = vpop.permute.xlu1 %1492 }
 0x8a6   :  { %v1513_v41 = vsel %vm160_vm2, %v2473_v44, %v1493_v32 }
 0x8a7   :  { %v2208_v8 = vpop.eup %2207 }
 0x8a8   :  { %v1320_v10 = vsel %vm160_vm2, %v2208_v8, 0.0 }
 0x8a9   :  { %1321 = vadd.xlane.f32.xlu0 %v1320_v10  ;;  %v1501_v35 = vpop.permute.xlu1 %1500 }
 0x8aa   :  { %v1516_v43 = vsel %vm1514_vm4, %v1513_v41, %v1501_v35 }
 0x8ab   :  { %v2210_v9 = vpop.eup %2209 }
 0x8ac   :  { %v1323_v12 = vsel %vm160_vm2, %v2210_v9, 0.0 }
 0x8ad   :  { %1324 = vadd.xlane.f32.xlu0 %v1323_v12 }
 0x8c3   :  { %1408 = vrot.lane.b32.xlu0 %v2422_v11, %s2304_s23 }
 0x8c7   :  { %1498 = vrot.lane.b32.xlu0 %v1072_v39, %s2305_s24 }
 0x932   :  { %v1322_v13 = vpop.xlane.xlu0 %1321 }
 0x933   :  { %2211 = vrcp.f32 %v1322_v13 }
 0x936   :  { %v1325_v14 = vpop.xlane.xlu0 %1324 }
 0x937   :  { %2213 = vrcp.f32 %v1325_v14  ;;  %v1961_v14 = vld [vmem:[%s2672_s9] ss:$0 sm:$0xff] }
 0x93a   :  { %v1409_v15 = vpop.permute.xlu0 %1408 }
 0x93b   :  { %2118 = vmatpush3.msra.mxu1 %v1409_v15 }
 0x93e   :  { %v1499_v33 = vpop.permute.xlu0 %1498 }
 0x93f   :  { %v1515_v36 = vsel %vm1514_vm4, %v1512_v34, %v1499_v33  ;;  %v1966_v33 = vld [vmem:[%s2671_s8] ss:$0 sm:$0xff] }
 0x940   :  { %v2212_v16 = vpop.eup %2211 }
 0x941   :  { %v1327_v17 = vmul.f32 %v2212_v16, %v2208_v8  ;;  %v1962_v16 = vld [vmem:[%s2673_s10] ss:$0 sm:$0xff] }
 0x943   :  { %2115 = vmatmul.mubr.msk.f32.vlgmr.msra.gmra.mxu0 %vm160_vm2, %v1327_v17  ;;  %v1330_v18 = vadd.f32 %v1327_v17, %v2528_v47  ;;  %v1958_v47 = vld [vmem:[%s2667_s4] ss:$0 sm:$0xff] }
 0x944   :  { %v2214_v19 = vpop.eup %2213  ;;  %2123 = vmatpush3.msra.mxu0 %v1523_v23  ;;  %v1755_v23 = vld [vmem:[%s2670_s7 + $0x10] sm:$0xff] }
 0x945   :  { %v1329_v20 = vmul.f32 %v2214_v19, %v2210_v9  ;;  %v1484_v21 = vmul.f32 0.25, %v1330_v18  ;;  %2124 = vmatprep.subr.mxu0 %v1522_v24 }
 0x946   :  { %2125 = vmatpush3.msra.mxu0 %v1522_v24  ;;  %v1754_v24 = vld [vmem:[%s2670_s7 + $0x8] sm:$0xff] }
 0x947   :  { %2120 = vmatmul.mubr.msk.f32.vlgmr.msra.gmra.mxu1 %vm160_vm2, %v1329_v20  ;;  %v1331_v22 = vadd.f32 %v1329_v20, %v999_v37  ;;  %1486 = vst.msk [vmem:[#allocation6] sm:$0xff] %vm160_vm2, %v1484_v21  ;;  %2126 = vmatprep.subr.mxu0 %v1521_v25 }
 0x948   :  { %2127 = vmatpush3.msra.mxu0 %v1521_v25  ;;  %v1753_v25 = vld [vmem:[%s2670_s7] sm:$0xff] }
 0x949   :  { %v1485_v11 = vmul.f32 0.25, %v1331_v22  ;;  %2128 = vmatprep.subr.mxu0 %v1520_v26 }
 0x94a   :  { %2129 = vmatpush3.msra.mxu0 %v1520_v26  ;;  %v1963_v26 = vld [vmem:[%s2669_s6] ss:$0 sm:$0xff]  ;;  %s2307_s6 = smov [#allocation6]  }
 0x94b   :  { %1487 = vst.msk [vmem:[#allocation6 + $0x8] sm:$0xff] %vm160_vm2, %v1485_v11  ;;  %2144 = vmatprep.subr.mxu0 %v1760_v63  ;;  %v1756_v11 = vld [vmem:[%s2670_s7 + $0x18] sm:$0xff]  ;;  %s1915_s7 = sshll.u32 %s2307_s6, 4  ;;  %s1916_s7 = int_to_ptr.vmem [resolvable:$true] %s1915_s7 }
 0x94c   :  { %s2243_s8 = scalar_lea.vmem %s1916_s7, 256  ;;  %p2248_p6 = scmp.lt.s32.totalorder %s1916_s7, %s1916_s7 }
 0x94d   :  { %p2244_p5 = scmp.ne.s32.totalorder %s1916_s7, %s2243_s8  ;;  %p2249_p7 = scmp.lt.s32.totalorder %s2243_s8, %s2243_s8 }
 0x94f   :  { %p2250_p8 = por %p2249_p7, %p2248_p6 }
 0x951   :  { %p2251_p9 = pnand %p2250_p8, %p2244_p5 }
 0xa03   :  { %v1404_v27 = vpop.f32.mrf.mxu0 }
 0xa04   :  { %1506 = vrot.lane.b32.xlu0 %v1404_v27, %s2306_s30 }
 0xa05   :  { %v2116_v28 = vpop.f32.mrf.mxu0 }
 0xa07   :  { %v1480_v29 = vpop.f32.mrf.mxu1 }
 0xa08   :  { %1508 = vrot.lane.b32.xlu1 %v1480_v29, %s2306_s30 }
 0xa09   :  { %v2121_v30 = vpop.f32.mrf.mxu1 }
 0xa76   :  { %v1507_v38 = vpop.permute.xlu0 %1506 }
 0xa77   :  { %v1518_v40 = vsel %vm1517_vm3, %v1515_v36, %v1507_v38 }
 0xa78   :  { %2130 = vmatprep.mubr.msk.f32.mxu0 %vm75_vm0, %v1518_v40 }
 0xa7a   :  { %v1509_v45 = vpop.permute.xlu1 %1508 }
 0xa7b   :  { %v1519_v46 = vsel %vm1517_vm3, %v1516_v43, %v1509_v45 }
 0xa7c   :  { %2131 = vmatmul.mubr.msk.f32.vlgmr.msra.gmra.mxu0 %vm75_vm0, %v1519_v46 }
 0xa7d   :  { %2145 = vmatpush3.msra.mxu0 %v1760_v63 }
 0xa7e   :  { %2146 = vmatprep.subr.mxu0 %v1759_v0 }
 0xa7f   :  { %2147 = vmatpush3.msra.mxu0 %v1759_v0 }
 0xa80   :  { %2148 = vmatprep.subr.mxu0 %v1758_v1 }
 0xa81   :  { %2149 = vmatpush3.msra.mxu0 %v1758_v1 }
 0xa82   :  { %2150 = vmatprep.subr.mxu0 %v1757_v3 }
 0xa83   :  { %2151 = vmatpush3.msra.mxu0 %v1757_v3 }
 0xa84   :  { %2152 = vmatprep.subr.mxu0 %v1756_v11 }
 0xa85   :  { %2153 = vmatpush3.msra.mxu0 %v1756_v11 }
 0xa86   :  { %2154 = vmatprep.subr.mxu0 %v1755_v23 }
 0xa87   :  { %2155 = vmatpush3.msra.mxu0 %v1755_v23 }
 0xa88   :  { %2156 = vmatprep.subr.mxu0 %v1754_v24 }
 0xa89   :  { %2157 = vmatpush3.msra.mxu0 %v1754_v24 }
 0xa8a   :  { %2158 = vmatprep.subr.mxu0 %v1753_v25 }
 0xa8b   :  { %2159 = vmatpush3.msra.mxu0 %v1753_v25 }
 0xb3c   :  { %v2132_v42 = vpop.f32.mrf.mxu0 }
 0xb3d   :  { %v1609_v48 = vadd.f32 %v2132_v42, %v1958_v47 }
 0xb3e   :  { %v1603_v49 = vpop.f32.mrf.mxu0 }
 0xb3f   :  { %v1604_v50 = vadd.f32 %v1958_v47, %v1603_v49  ;;  %v1613_v51 = vadd.f32 %v1609_v48, %v2406_v5 }
 0xb41   :  { %v1617_v52 = vsel %vm75_vm0, %v1613_v51, 0.0  ;;  %v1612_v37 = vadd.f32 %v1604_v50, %v2396_v2  ;;  %v1662_v2 = vld [vmem:[%s2668_s5 + $0x18] sm:$0xff] }
 0xb42   :  { %1618 = vadd.xlane.f32.xlu1 %v1617_v52  ;;  %2133 = vmatprep.subr.mxu1 %v1662_v2 }
 0xb43   :  { %v1614_v44 = vsel %vm75_vm0, %v1612_v37, 0.0  ;;  %2134 = vmatpush3.msra.mxu1 %v1662_v2 }
 0xb44   :  { %1615 = vadd.xlane.f32.xlu0 %v1614_v44  ;;  %2135 = vmatprep.subr.mxu1 %v1661_v61 }
 0xb45   :  { %2136 = vmatpush3.msra.mxu1 %v1661_v61 }
 0xb46   :  { %2137 = vmatprep.subr.mxu1 %v1660_v62 }
 0xb47   :  { %2138 = vmatpush3.msra.mxu1 %v1660_v62 }
 0xb48   :  { %2139 = vmatprep.subr.mxu1 %v1659_v6 }
 0xb49   :  { %2140 = vmatpush3.msra.mxu1 %v1659_v6 }
 0xbcb   :  { %v1619_v53 = vpop.xlane.xlu1 %1618 }
 0xbcc   :  { %v1622_v39 = vmul.f32 0.03125, %v1619_v53 }
 0xbcd   :  { %v1616_v54 = vpop.xlane.xlu0 %1615 }
 0xbce   :  { %v1621_v55 = vmul.f32 0.03125, %v1616_v54  ;;  %v1624_v56 = vsub.f32 %v1613_v51, %v1622_v39 }
 0xbd0   :  { %v1623_v57 = vsub.f32 %v1612_v37, %v1621_v55  ;;  %v1626_v60 = vmul.f32 %v1624_v56, %v1624_v56 }
 0xbd2   :  { %v1625_v58 = vmul.f32 %v1623_v57, %v1623_v57  ;;  %v1630_v5 = vsel %vm75_vm0, %v1626_v60, 0.0 }
 0xbd4   :  { %v1627_v59 = vsel %vm75_vm0, %v1625_v58, 0.0 }
 0xbd5   :  { %1628 = vadd.xlane.f32.xlu0 %v1627_v59 }
 0xbd9   :  { %1631 = vadd.xlane.f32.xlu0 %v1630_v5 }
 0xc5e   :  { %v1629_v4 = vpop.xlane.xlu0 %1628 }
 0xc5f   :  { %v1633_v7 = vmul.f32 0.03125, %v1629_v4 }
 0xc61   :  { %v1635_v8 = vadd.f32 1e-05, %v1633_v7 }
 0xc62   :  { %v1632_v10 = vpop.xlane.xlu0 %1631 }
 0xc63   :  { %2215 = vrsqrt.f32 %v1635_v8  ;;  %v1634_v9 = vmul.f32 0.03125, %v1632_v10 }
 0xc65   :  { %v1636_v12 = vadd.f32 1e-05, %v1634_v9 }
 0xc67   :  { %2217 = vrsqrt.f32 %v1636_v12 }
 0xc70   :  { %v2216_v13 = vpop.eup %2215 }
 0xc71   :  { %v1639_v15 = vmul.f32 %v2216_v13, %v1623_v57 }
 0xc73   :  { %v1648_v17 = vmul.f32 %v1961_v14, %v1639_v15 }
 0xc74   :  { %v2218_v18 = vpop.eup %2217 }
 0xc75   :  { %v1640_v19 = vmul.f32 %v2218_v18, %v1624_v56  ;;  %v1657_v20 = vadd.f32 %v1962_v16, %v1648_v17 }
 0xc77   :  { %v1649_v21 = vmul.f32 %v1961_v14, %v1640_v19  ;;  %2141 = vmatprep.mubr.msk.f32.mxu1 %vm75_vm0, %v1657_v20 }
 0xc79   :  { %v1658_v22 = vadd.f32 %v1962_v16, %v1649_v21 }
 0xc7b   :  { %2142 = vmatmul.mubr.msk.f32.vlgmr.msra.gmra.mxu1 %vm75_vm0, %v1658_v22 }
 0xd3b   :  { %v2143_v27 = vpop.f32.mrf.mxu1 }
 0xd3c   :  { %v1748_v28 = vadd.f32 %v2143_v27, %v1963_v26 }
 0xd3d   :  { %v1742_v29 = vpop.f32.mrf.mxu1 }
 0xd3e   :  { %v1743_v30 = vadd.f32 %v1963_v26, %v1742_v29  ;;  %v1752_v32 = vmax.f32 %v1748_v28, 0.0 }
 0xd40   :  { %v1751_v31 = vmax.f32 %v1743_v30, 0.0 }
 0xd42   :  { %2160 = vmatprep.mubr.msk.f32.mxu0 %vm1768_vm5, %v1751_v31 }
 0xd43   :  { %2161 = vmatmul.mubr.msk.f32.vlgmr.msra.gmra.mxu0 %vm1768_vm5, %v1752_v32 }
 0xe03   :  { %v2162_v34 = vpop.f32.mrf.mxu0 }
 0xe04   :  { %v1847_v35 = vadd.f32 %v2162_v34, %v1966_v33 }
 0xe05   :  { %v1841_v36 = vpop.f32.mrf.mxu0 }
 0xe06   :  { %v1842_v38 = vadd.f32 %v1966_v33, %v1841_v36  ;;  %v1851_v40 = vadd.f32 %v1847_v35, %v1658_v22 }
 0xe08   :  { %v1855_v41 = vsel %vm75_vm0, %v1851_v40, 0.0  ;;  %v1850_v43 = vadd.f32 %v1842_v38, %v1657_v20 }
 0xe09   :  { %1856 = vadd.xlane.f32.xlu0 %v1855_v41 }
 0xe0a   :  { %v1852_v45 = vsel %vm75_vm0, %v1850_v43, 0.0 }
 0xe0b   :  { %1853 = vadd.xlane.f32.xlu1 %v1852_v45 }
 0xe92   :  { %v1857_v46 = vpop.xlane.xlu0 %1856 }
 0xe93   :  { %v1859_v47 = vmul.f32 0.03125, %v1857_v46 }
 0xe94   :  { %v1854_v42 = vpop.xlane.xlu1 %1853 }
 0xe95   :  { %v1861_v48 = vsub.f32 %v1851_v40, %v1859_v47  ;;  %v1858_v49 = vmul.f32 0.03125, %v1854_v42 }
 0xe97   :  { %v1860_v50 = vsub.f32 %v1850_v43, %v1858_v49  ;;  %v1863_v51 = vmul.f32 %v1861_v48, %v1861_v48 }
 0xe99   :  { %v1867_v52 = vsel %vm75_vm0, %v1863_v51, 0.0  ;;  %v1862_v37 = vmul.f32 %v1860_v50, %v1860_v50 }
 0xe9a   :  { %1868 = vadd.xlane.f32.xlu0 %v1867_v52 }
 0xe9b   :  { %v1864_v44 = vsel %vm75_vm0, %v1862_v37, 0.0 }
 0xe9c   :  { %1865 = vadd.xlane.f32.xlu1 %v1864_v44 }
 0xe9d   :  { %2254 = shalt.err (!%p2251_p9)
}
 0xe9e   :  { %1921 = dma.vmem_to_hbm [thread:$0]  %s1916_s7, 256, %s2677_s14, [#allocation7], %s2290_s16, %s2290_s16, %s2291_s17  }
 0xe9f   :  { %v1969_v59 = vld [vmem:[%s2674_s11] ss:$0 sm:$0xff]  ;;  %s2308_s14 = smov [#allocation5]  }
 0xea0   :  { %v1970_v2 = vld [vmem:[%s2675_s12] ss:$0 sm:$0xff]  ;;  %s1903_s29 = sshll.u32 %s2308_s14, 4  ;;  %s1904_s29 = int_to_ptr.vmem [resolvable:$true] %s1903_s29 }
 0xea1   :  { %s2263_s30 = scalar_lea.vmem %s1904_s29, 256  ;;  %p2268_p11 = scmp.lt.s32.totalorder %s1904_s29, %s1904_s29 }
 0xea2   :  { %p2264_p10 = scmp.ne.s32.totalorder %s1904_s29, %s2263_s30  ;;  %p2269_p12 = scmp.lt.s32.totalorder %s2263_s30, %s2263_s30 }
 0xea4   :  { %p2270_p13 = por %p2269_p12, %p2268_p11 }
 0xea6   :  { %p2271_p0 = pnand %p2270_p13, %p2264_p10 }
 0xf23   :  { %v1869_v53 = vpop.xlane.xlu0 %1868 }
 0xf24   :  { %v1871_v39 = vmul.f32 0.03125, %v1869_v53 }
 0xf25   :  { %v1866_v54 = vpop.xlane.xlu1 %1865 }
 0xf26   :  { %v1873_v55 = vadd.f32 1e-05, %v1871_v39  ;;  %v1870_v56 = vmul.f32 0.03125, %v1866_v54 }
 0xf28   :  { %2219 = vrsqrt.f32 %v1873_v55  ;;  %v1872_v57 = vadd.f32 1e-05, %v1870_v56 }
 0xf2a   :  { %2221 = vrsqrt.f32 %v1872_v57 }
 0xf35   :  { %v2220_v58 = vpop.eup %2219 }
 0xf36   :  { %v1877_v60 = vmul.f32 %v2220_v58, %v1861_v48 }
 0xf37   :  { %v2222_v5 = vpop.eup %2221 }
 0xf38   :  { %v1876_v61 = vmul.f32 %v2222_v5, %v1860_v50  ;;  %v1886_v62 = vmul.f32 %v1969_v59, %v1877_v60 }
 0xf3a   :  { %v1885_v6 = vmul.f32 %v1969_v59, %v1876_v61  ;;  %v1895_v63 = vadd.f32 %v1970_v2, %v1886_v62 }
 0xf3c   :  { %v1894_v0 = vadd.f32 %v1970_v2, %v1885_v6  ;;  %1897 = vst.msk [vmem:[#allocation5 + $0x8] sm:$0xff] %vm75_vm0, %v1895_v63 }
 0xf3e   :  { %1896 = vst.msk [vmem:[#allocation5] sm:$0xff] %vm75_vm0, %v1894_v0 }
 0xf3f   :  { %2274 = shalt.err (!%p2271_p0)
}
 0xf40   :  { %1909 = dma.vmem_to_hbm [thread:$0]  %s1904_s29, 256, %s2676_s13, [#allocation4], %s2290_s16, %s2290_s16, %s2291_s17  }
 0xf41   :  { %2285 = dma.done.wait [#allocation4], 256  }
 0xf42   :  { %2286 = vsyncadd [#allocation4], 4294967040 }
 0xf43   :  { %2287 = dma.done.wait [#allocation7], 256  }
 0xf44   :  { %2288 = vsyncadd [#allocation7], 4294967040 }
 0xf45   :  { %1928 = vsyncpa [#allocation3], 1 }
 0xf46   :  { %1929 = vsyncpa [#allocation4], 1 }
 0xf47   :  { %1930 = vsyncpa [#allocation7], 1 }

</bundles_post_ra>
